<compile_context>
chip_gen: v5e
topology: v5e:2x2
jax: 0.10.0
libtpu: 0.0.40
codegen_flags: <defaults>
</compile_context>

<pallas_src>
import jax
import jax.numpy as jnp
from jax import lax
from jax.experimental import pallas as pl
from jax.experimental.pallas import tpu as pltpu


def _addmm_kernel(inp_ref, x2t_ref, x1_ref, o_ref):
    # (inp + 2) in f32 on the VPU (free next to the MXU).
    a = inp_ref[...] + 2.0
    # Contract over K, which is the last (lane) axis of both operands:
    #   (M, K) x (N, K) -> (M, N)   i.e.  (inp + 2) @ x2
    v1 = lax.dot_general(
        a,
        x2t_ref[...],
        dimension_numbers=(((1,), (1,)), ((), ())),
        preferred_element_type=jnp.float32,
    )
    # Bias add in f32 on the VPU, then store.
    o_ref[...] = (v1 + x1_ref[...]).astype(o_ref.dtype)


def addmm_model(x1, x2, inp):
    """Computes (inp + 2) @ x2 + x1, matching the PyTorch Model.forward."""
    M, K = inp.shape
    K2, N = x2.shape
    assert K == K2 and x1.shape == (M, N)

    # Lane-dense layout: present K along the 128-lane (last) dimension.
    x2t = x2.T  # (N, K)

    itemsize = 4  # f32
    cost = pl.CostEstimate(
        flops=2 * M * K * N + M * K + M * N,
        transcendentals=0,
        bytes_accessed=(M * K + K * N + M * N + M * N) * itemsize,
    )

    # TODO(synk): if this op sits inside a larger JAX program, prefer fusing it
    # into a neighboring kernel (or letting XLA fuse it) instead of a
    # standalone custom call — dispatch latency dominates this ~10 KFLOP op.
    return pl.pallas_call(
        _addmm_kernel,
        out_shape=jax.ShapeDtypeStruct((M, N), jnp.float32),
        in_specs=[
            pl.BlockSpec(memory_space=pltpu.MemorySpace.VMEM),  # inp (M, K)
            pl.BlockSpec(memory_space=pltpu.MemorySpace.VMEM),  # x2^T (N, K)
            pl.BlockSpec(memory_space=pltpu.MemorySpace.VMEM),  # x1 (M, N)
        ],
        out_specs=pl.BlockSpec(memory_space=pltpu.MemorySpace.VMEM),
        cost_estimate=cost,
    )(inp, x2t, x1)


if __name__ == "__main__":
    key = jax.random.PRNGKey(0)
    k1, k2, k3 = jax.random.split(key, 3)

    # Shapes consistent with the PyTorch module:
    #   inp (3, 555), x1 (3, 3), x2 (555, 3)
    inp = jax.random.normal(k1, (3, 555), dtype=jnp.float32)
    x1 = jax.random.normal(k2, (3, 3), dtype=jnp.float32)
    x2 = jax.random.normal(k3, (555, 3), dtype=jnp.float32)

    out = addmm_model(x1, x2, inp)
    jax.block_until_ready(out)

    # Reference check in plain JAX.
    ref = jnp.dot(inp + 2.0, x2) + x1
    assert jnp.allclose(out, ref, atol=1e-4, rtol=1e-4), "mismatch vs reference"

    print("KERNEL_OK")
</pallas_src>

<mosaic_0001>
module attributes {stable_mosaic.version = 11 : i64} {
  func.func @_addmm_kernel(%arg0: memref<3x555xf32, #tpu.memory_space<vmem>>, %arg1: memref<3x555xf32, #tpu.memory_space<vmem>>, %arg2: memref<3x3xf32, #tpu.memory_space<vmem>>, %arg3: memref<3x3xf32, #tpu.memory_space<vmem>>) attributes {dimension_semantics = [], scalar_prefetch = 0 : i64, scratch_operands = 0 : i64, tpu.core_type = #tpu.core_type<tc>} {
    %c0 = arith.constant 0 : index
    %c0_0 = arith.constant 0 : index
    %0 = vector.load %arg0[%c0, %c0_0] : memref<3x555xf32, #tpu.memory_space<vmem>>, vector<3x555xf32>
    %cst = arith.constant 2.000000e+00 : f32
    %1 = vector.broadcast %cst : f32 to vector<3x555xf32>
    %2 = arith.addf %0, %1 : vector<3x555xf32>
    %c0_1 = arith.constant 0 : index
    %c0_2 = arith.constant 0 : index
    %3 = vector.load %arg1[%c0_1, %c0_2] : memref<3x555xf32, #tpu.memory_space<vmem>>, vector<3x555xf32>
    %cst_3 = arith.constant dense<0.000000e+00> : vector<3x3xf32>
    %4 = tpu.matmul %2, %3, %cst_3 {dimension_numbers = #tpu.dot_dimension_numbers<[1], [1], [0], [0], [0, 0, 1, 0], [], []>} : vector<3x555xf32>, vector<3x555xf32>, vector<3x3xf32> -> vector<3x3xf32>
    %c0_4 = arith.constant 0 : index
    %c0_5 = arith.constant 0 : index
    %5 = vector.load %arg2[%c0_4, %c0_5] : memref<3x3xf32, #tpu.memory_space<vmem>>, vector<3x3xf32>
    %6 = arith.addf %4, %5 : vector<3x3xf32>
    %c0_6 = arith.constant 0 : index
    %c0_7 = arith.constant 0 : index
    %7 = vector.load %arg3[%c0_6, %c0_7] : memref<3x3xf32, #tpu.memory_space<vmem>>, vector<3x3xf32>
    tpu.vector_store %arg3[%c0_6, %c0_7], %6 {strides = array<i32>} : memref<3x3xf32, #tpu.memory_space<vmem>>, vector<3x3xf32>,
    return
  }
}

</mosaic_0001>

<bundles_post_ra>
// kernel: tpu_custom_call.1
= control target key start
LH: loop header
LB: loop body
LE: loop exit
PB: predicated region body
PF: predicated region fallthrough
CT: control target
= control target key end

     0   :  { %8 = vsyncpa [#allocation3], 0  ;;  %s369_s0 = inlined_call_operand.hbm [shape: f32[3,555], index: 0, kind: input, shape index: {}]   ;;  %s370_s1 = inlined_call_operand.hbm [shape: f32[3,555], index: 1, kind: input, shape index: {}]   ;;  %s371_s2 = inlined_call_operand.hbm [shape: f32[3,3], index: 2, kind: input, shape index: {}]   ;;  %s372_s3 = inlined_call_operand.hbm [shape: f32[3,3], index: 3, kind: output, shape index: {}]  }
   0x1   :  { %9 = vsyncpa [#allocation6], 0  ;;  %s27_s14 = sshll.u32 %s370_s1, 4  ;;  %s28_s14 = int_to_ptr.hbm [resolvable:$true] %s27_s14 }
   0x2   :  { %10 = vsyncpa [#allocation4], 0  ;;  %s333_s15 = smov [#allocation5]   ;;  %s16_s19 = sshll.u32 %s369_s0, 4  ;;  %s17_s19 = int_to_ptr.hbm [resolvable:$true] %s16_s19 }
   0x3   :  { %s29_s16 = sshll.u32 %s333_s15, 4  ;;  %s334_s20 = smov [#allocation2]   ;;  %s30_s16 = int_to_ptr.vmem [resolvable:$true] %s29_s16 }
   0x4   :  { %32 = dma.hbm_to_vmem [thread:$0]  %s28_s14, 320, %s30_s16, [#allocation6]  }
   0x5   :  { %s18_s21 = sshll.u32 %s334_s20, 4  ;;  %s38_s24 = sshll.u32 %s371_s2, 4  ;;  %s19_s21 = int_to_ptr.vmem [resolvable:$true] %s18_s21  ;;  %s39_s24 = int_to_ptr.hbm [resolvable:$true] %s38_s24 }
   0x6   :  { %21 = dma.hbm_to_vmem [thread:$0]  %s17_s19, 320, %s19_s21, [#allocation3]  }
   0x7   :  { %s335_s1 = smov [#allocation7]  }
   0x8   :  { %s40_s25 = sshll.u32 %s335_s1, 4  ;;  %s41_s25 = int_to_ptr.vmem [resolvable:$true] %s40_s25 }
   0x9   :  { %43 = dma.hbm_to_vmem [thread:$0]  %s39_s24, 64, %s41_s25, [#allocation6]  }
   0xa   :  { %327 = dma.done.wait [#allocation3], 320  }
   0xb   :  { %328 = vsyncadd [#allocation3], 4294966976 }
   0xc   :  { %329 = dma.done.wait [#allocation6], 384  }
   0xd   :  { %330 = vsyncadd [#allocation6], 4294966912  ;;  %v57_v0 = vld [vmem:[#allocation2 + $0x8] sm:$0x77]  ;;  %v56_v1 = vld [vmem:[#allocation2] sm:$0x77] }
   0xe   :  { %v60_v2 = vadd.f32 2.0, %v57_v0  ;;  %v59_v3 = vadd.f32 2.0, %v56_v1  ;;  %v58_v4 = vld [vmem:[#allocation2 + $0x10] sm:$0x7]  ;;  %v63_v6 = vld [vmem:[#allocation5 + $0x8] sm:$0x77] }
   0xf   :  { %v61_v5 = vadd.f32 2.0, %v58_v4  ;;  %v62_v7 = vld [vmem:[#allocation5] sm:$0x77]  ;;  %v64_v8 = vld [vmem:[#allocation5 + $0x10] sm:$0x7]  ;;  %vm100_vm0 = vcmask 351232  }
  0x10   :  { %71 = vst [vmem:[#allocation1 + $0x10] ss:$2 sm:$0xff] %v60_v2  ;;  %v65_v19 = vld [vmem:[#allocation7] sm:$0x7]  ;;  %s336_s0 = smov [#allocation8]   ;;  %s214_s28 = sshll.u32 %s372_s3, 4  ;;  %s215_s28 = int_to_ptr.hbm [resolvable:$true] %s214_s28 }
  0x11   :  { %69 = vst [vmem:[#allocation1] ss:$2 sm:$0xff] %v59_v3  ;;  %s212_s2 = sshll.u32 %s336_s0, 4  ;;  %vm205_vm1 = vcmask 18432   ;;  %s213_s2 = int_to_ptr.vmem [resolvable:$true] %s212_s2 }
  0x12   :  { %73 = vst [vmem:[#allocation1 + $0x20] ss:$2 sm:$0xff] %v61_v5 }
  0x17   :  { %v76_v9 = vld.sshfl [vmem:[#allocation1 + $0x10] sm:$0xff pattern:$0x75316420]  ;;  %v77_v10 = vld.sshfl [vmem:[#allocation1 + $0x18] sm:$0xff pattern:$0x75316420] }
  0x18   :  { %88 = vst [vmem:[#allocation1 + $0x10] ss:$2 sm:$0xff] %v63_v6  ;;  %v74_v11 = vld.sshfl [vmem:[#allocation1] sm:$0xff pattern:$0x75316420] }
  0x19   :  { %v75_v12 = vld.sshfl [vmem:[#allocation1 + $0x8] sm:$0xff pattern:$0x75316420]  ;;  %v78_v13 = vld.sshfl [vmem:[#allocation1 + $0x20] sm:$0xff pattern:$0x75316420] }
  0x1a   :  { %86 = vst [vmem:[#allocation1] ss:$2 sm:$0xff] %v62_v7 }
  0x1b   :  { %90 = vst [vmem:[#allocation1 + $0x20] ss:$2 sm:$0xff] %v64_v8 }
  0x1f   :  { %v93_v14 = vld.sshfl [vmem:[#allocation1 + $0x10] sm:$0xff pattern:$0x75316420]  ;;  %v94_v15 = vld.sshfl [vmem:[#allocation1 + $0x18] sm:$0xff pattern:$0x75316420] }
  0x20   :  { %160 = vmatpush.xpose.msra.mxu2 %v93_v14  ;;  %180 = vmatpush.xpose.msra.mxu3 %v94_v15 }
  0x21   :  { %v91_v16 = vld.sshfl [vmem:[#allocation1] sm:$0xff pattern:$0x75316420]  ;;  %v92_v17 = vld.sshfl [vmem:[#allocation1 + $0x8] sm:$0xff pattern:$0x75316420] }
  0x22   :  { %120 = vmatpush.xpose.msra.mxu0 %v91_v16  ;;  %140 = vmatpush.xpose.msra.mxu1 %v92_v17  ;;  %v95_v18 = vld.sshfl [vmem:[#allocation1 + $0x20] sm:$0xff pattern:$0x75316420] }
  0x23   :  { %161 = vmatmul.f32.vlgmr.msra.gmra.mxu2 %v76_v9  ;;  %181 = vmatmul.f32.vlgmr.msra.gmra.mxu3 %v77_v10 }
  0x25   :  { %121 = vmatmul.f32.vlgmr.msra.gmra.mxu0 %v74_v11  ;;  %141 = vmatmul.f32.vlgmr.msra.gmra.mxu1 %v75_v12 }
  0x26   :  { %225 = vmatpush.xpose.msk.msrb.mxu0 %vm100_vm0, %v95_v18 }
  0x2d   :  { %226 = vmatmul.msk.f32.vlgmr.msrb.gmra.mxu0 %vm100_vm0, %v78_v13 }
  0xa2   :  { %v122_v20 = vpop.f32.mrf.mxu0  ;;  %v142_v21 = vpop.f32.mrf.mxu1 }
  0xa3   :  { %v123_v22 = vadd.f32 %v122_v20, %v65_v19 }
  0xa5   :  { %v143_v23 = vadd.f32 %v142_v21, %v123_v22 }
  0xa6   :  { %v162_v24 = vpop.f32.mrf.mxu2  ;;  %v182_v25 = vpop.f32.mrf.mxu3 }
  0xa7   :  { %v163_v26 = vadd.f32 %v162_v24, %v143_v23 }
  0xa9   :  { %v183_v27 = vadd.f32 %v182_v25, %v163_v26 }
  0xaa   :  { %v202_v28 = vpop.f32.mrf.mxu0 }
  0xab   :  { %v203_v29 = vadd.f32 %v202_v28, %v183_v27 }
  0xad   :  { %206 = vst.msk [vmem:[#allocation8] sm:$0x7] %vm205_vm1, %v203_v29 }
  0xae   :  { %217 = dma.vmem_to_hbm [thread:$0]  %s213_s2, 64, %s215_s28, [#allocation4]  }
  0xaf   :  { %331 = dma.done.wait [#allocation4], 64  }
  0xb0   :  { %332 = vsyncadd [#allocation4], 4294967232 }
  0xb1   :  { %222 = vsyncpa [#allocation3], 1 }
  0xb2   :  { %223 = vsyncpa [#allocation6], 1 }
  0xb3   :  { %224 = vsyncpa [#allocation4], 1 }

</bundles_post_ra>
